<compile_context>
chip_gen: v7x
topology: tpu7x:2x2x1
jax: 0.10.0
libtpu: 0.0.40
codegen_flags: <defaults>
</compile_context>

<pallas_src>
import functools

import jax
import jax.numpy as jnp
from jax import lax
from jax.experimental import pallas as pl
from jax.experimental.pallas import tpu as pltpu

# contract the last dim of both operands: (m, k) x (n, k) -> (m, n)
_NT = (((1,), (1,)), ((), ()))


def res_attention_kernel(x_full_ref, x_row_ref, w_ref, b_ref, a1_ref, a2_ref,
                         out_ref, *, n_valid, alpha, thr):
    f32 = jnp.float32
    hi = lax.Precision.HIGHEST

    n_pad = x_full_ref.shape[0]          # padded number of entities (columns)
    tn = x_row_ref.shape[0]              # row tile handled by this grid step

    x_full = x_full_ref[...]             # (Np, d)  resident across grid steps
    x_row = x_row_ref[...]               # (TN, d)  this step's rows
    w = w_ref[...]                       # (d, d)   PyTorch Linear weight (out, in)
    b = b_ref[...]                       # (1, d)

    # Wh = x @ W^T + b  (NT dot -> no transpose materialized).
    # wh_full is needed for the "column" side (s2) and for attention @ Wh;
    # recomputing the small row tile is cheaper than staging it across steps.
    wh_full = lax.dot_general(x_full, w, _NT,
                              preferred_element_type=f32, precision=hi) + b   # (Np, d)
    wh_row = lax.dot_general(x_row, w, _NT,
                             preferred_element_type=f32, precision=hi) + b    # (TN, d)

    # Factorized attention logits: e[r, c] = LeakyReLU(wh_row[r].a1 + wh_full[c].a2)
    s1 = lax.dot_general(wh_row, a1_ref[...], _NT,
                         preferred_element_type=f32, precision=hi)            # (TN, 1)
    s2 = lax.dot_general(a2_ref[...], wh_full, _NT,
                         preferred_element_type=f32, precision=hi)            # (1, Np)
    pre = s1 + s2                                                             # (TN, Np)
    e = jnp.where(pre >= 0, pre, alpha * pre)                                 # LeakyReLU

    # Mask padded columns, then row-wise softmax over the lane axis.
    col = lax.broadcasted_iota(jnp.int32, (tn, n_pad), 1)
    valid = col < n_valid
    e = jnp.where(valid, e, -1e30)
    m = jnp.max(e, axis=1, keepdims=True)
    p = jnp.exp(e - m)
    p = jnp.where(valid, p, 0.0)
    attn = p / jnp.sum(p, axis=1, keepdims=True)

    # Hard threshold: keep only entries strictly below thr.
    attn = jnp.where(attn < thr, attn, 0.0)

    # h_prime = attention @ Wh  (padded columns have attn == 0 -> no effect).
    h_prime = jnp.dot(attn, wh_full, preferred_element_type=f32, precision=hi)  # (TN, d)

    # ELU(entity_embs - h_prime), alpha = 1 (F.elu default).
    diff = x_row - h_prime
    out = jnp.where(diff > 0, diff, jnp.exp(jnp.minimum(diff, 0.0)) - 1.0)
    out_ref[...] = out.astype(out_ref.dtype)


def res_attention_layer(entity_embs, weight, bias, a, alpha, thr, *,
                        row_block=None):
    """Pallas equivalent of ResAttentionLayer.forward(entity_embs)."""
    N, d = entity_embs.shape
    assert weight.shape == (d, d)
    assert bias.shape == (d,)
    assert a.shape == (2 * d, 1)

    # Row tile (sublane-aligned); pad N up to a multiple of it.
    n_pad8 = ((N + 7) // 8) * 8
    tn = row_block if row_block is not None else min(128, n_pad8)
    assert tn % 8 == 0, "row_block must be a multiple of 8"
    n_pad = pl.cdiv(N, tn) * tn

    x = entity_embs.astype(jnp.float32)
    if n_pad != N:
        x = jnp.pad(x, ((0, n_pad - N), (0, 0)))

    w = weight.astype(jnp.float32)                 # (d, d), used via NT dot (no host .T)
    b_row = bias.astype(jnp.float32).reshape(1, d)
    a1_row = a[:d, 0].astype(jnp.float32).reshape(1, d)
    a2_row = a[d:, 0].astype(jnp.float32).reshape(1, d)

    full = lambda i: (0, 0)                        # resident blocks (constant index map)
    kernel = functools.partial(res_attention_kernel,
                               n_valid=N, alpha=float(alpha), thr=float(thr))

    out = pl.pallas_call(
        kernel,
        out_shape=jax.ShapeDtypeStruct((n_pad, d), jnp.float32),
        grid=(n_pad // tn,),
        in_specs=[
            pl.BlockSpec((n_pad, d), full),            # x (column / Wh side), resident
            pl.BlockSpec((tn, d), lambda i: (i, 0)),   # x row tile (residual + query rows)
            pl.BlockSpec((d, d), full),                # Linear weight
            pl.BlockSpec((1, d), full),                # Linear bias
            pl.BlockSpec((1, d), full),                # a[:d]  (row half of attention vec)
            pl.BlockSpec((1, d), full),                # a[d:]  (col half of attention vec)
        ],
        out_specs=pl.BlockSpec((tn, d), lambda i: (i, 0)),
        compiler_params=pltpu.CompilerParams(
            dimension_semantics=("parallel",)),
    )(x, x, w, b_row, a1_row, a2_row)
    return out[:N]


def res_attention_layer_ref(x, weight, bias, a, alpha, thr):
    """Pure-JAX reference mirroring the PyTorch forward (incl. _prepare_input)."""
    N, d = x.shape
    hi = lax.Precision.HIGHEST
    wh = jnp.dot(x, weight.T, precision=hi) + bias
    rep_chunks = jnp.repeat(wh, N, axis=0)          # repeat_interleave(N, dim=0)
    rep_alt = jnp.tile(wh, (N, 1))                  # repeat(N, 1)
    a_input = jnp.concatenate([rep_chunks, rep_alt], axis=1).reshape(N, N, 2 * d)
    e = jnp.matmul(a_input, a, precision=hi)[..., 0]
    e = jnp.where(e >= 0, e, alpha * e)             # LeakyReLU
    attn = jax.nn.softmax(e, axis=1)
    attn = jnp.where(attn < thr, attn, 0.0)
    h_prime = jnp.dot(attn, wh, precision=hi)
    diff = x - h_prime
    return jnp.where(diff > 0, diff, jnp.exp(jnp.minimum(diff, 0.0)) - 1.0)  # ELU


if __name__ == "__main__":
    # Small shapes consistent with the module: N entities, hidden_size = 32.
    N, hidden = 12, 32
    alpha, thr = 0.2, 0.5

    key = jax.random.PRNGKey(0)
    k_x, k_w, k_b, k_a = jax.random.split(key, 4)

    entity_embs = jax.random.normal(k_x, (N, hidden), dtype=jnp.float32)
    # nn.Linear default init: U(-1/sqrt(fan_in), 1/sqrt(fan_in))
    lim = 1.0 / hidden ** 0.5
    weight = jax.random.uniform(k_w, (hidden, hidden), minval=-lim, maxval=lim,
                                dtype=jnp.float32)
    bias = jax.random.uniform(k_b, (hidden,), minval=-lim, maxval=lim,
                              dtype=jnp.float32)
    # xavier_uniform_(a, gain=1.414): fan_in=1, fan_out=2*hidden
    bound = 1.414 * (6.0 / (2 * hidden + 1)) ** 0.5
    a = jax.random.uniform(k_a, (2 * hidden, 1), minval=-bound, maxval=bound,
                           dtype=jnp.float32)

    # row_block=8 -> padded N=16, grid=(2,): exercises tiling + column masking.
    out = res_attention_layer(entity_embs, weight, bias, a, alpha, thr,
                              row_block=8)
    out = jax.block_until_ready(out)

    ref = res_attention_layer_ref(entity_embs, weight, bias, a, alpha, thr)
    assert out.shape == (N, hidden) and out.dtype == jnp.float32
    assert jnp.allclose(out, ref, rtol=2e-3, atol=2e-3), (out, ref)

    print("KERNEL_OK")
</pallas_src>

<mosaic_0001>
module attributes {stable_mosaic.version = 11 : i64} {
  func.func @res_attention_kernel(%arg0: i32, %arg1: memref<16x32xf32, #tpu.memory_space<vmem>>, %arg2: memref<8x32xf32, #tpu.memory_space<vmem>>, %arg3: memref<32x32xf32, #tpu.memory_space<vmem>>, %arg4: memref<1x32xf32, #tpu.memory_space<vmem>>, %arg5: memref<1x32xf32, #tpu.memory_space<vmem>>, %arg6: memref<1x32xf32, #tpu.memory_space<vmem>>, %arg7: memref<8x32xf32, #tpu.memory_space<vmem>>) attributes {dimension_semantics = [#tpu.dimension_semantics<parallel>], iteration_bounds = array<i64: 2>, scalar_prefetch = 0 : i64, scratch_operands = 0 : i64, tpu.core_type = #tpu.core_type<tc>, window_params = [{pipeline_mode = #tpu.pipeline_mode<synchronous>, transform_indices = @transform_0, window_bounds = array<i64: 16, 32>}, {transform_indices = @transform_1, window_bounds = array<i64: 8, 32>}, {pipeline_mode = #tpu.pipeline_mode<synchronous>, transform_indices = @transform_2, window_bounds = array<i64: 32, 32>}, {pipeline_mode = #tpu.pipeline_mode<synchronous>, transform_indices = @transform_3, window_bounds = array<i64: 1, 32>}, {pipeline_mode = #tpu.pipeline_mode<synchronous>, transform_indices = @transform_4, window_bounds = array<i64: 1, 32>}, {pipeline_mode = #tpu.pipeline_mode<synchronous>, transform_indices = @transform_5, window_bounds = array<i64: 1, 32>}, {transform_indices = @transform_6, window_bounds = array<i64: 8, 32>}]} {
    %c0 = arith.constant 0 : index
    %c0_0 = arith.constant 0 : index
    %0 = vector.load %arg1[%c0, %c0_0] : memref<16x32xf32, #tpu.memory_space<vmem>>, vector<16x32xf32>
    %c0_1 = arith.constant 0 : index
    %c0_2 = arith.constant 0 : index
    %1 = vector.load %arg2[%c0_1, %c0_2] : memref<8x32xf32, #tpu.memory_space<vmem>>, vector<8x32xf32>
    %c0_3 = arith.constant 0 : index
    %c0_4 = arith.constant 0 : index
    %2 = vector.load %arg3[%c0_3, %c0_4] : memref<32x32xf32, #tpu.memory_space<vmem>>, vector<32x32xf32>
    %c0_5 = arith.constant 0 : index
    %c0_6 = arith.constant 0 : index
    %3 = vector.load %arg4[%c0_5, %c0_6] : memref<1x32xf32, #tpu.memory_space<vmem>>, vector<1x32xf32>
    %cst = arith.constant dense<0.000000e+00> : vector<16x32xf32>
    %4 = tpu.matmul %0, %2, %cst {dimension_numbers = #tpu.dot_dimension_numbers<[1], [1], [0], [0], [0, 0, 1, 0], [], []>, precision = #tpu.contract_precision<fp32>} : vector<16x32xf32>, vector<32x32xf32>, vector<16x32xf32> -> vector<16x32xf32>
    %5 = vector.broadcast %3 : vector<1x32xf32> to vector<16x32xf32>
    %6 = arith.addf %4, %5 : vector<16x32xf32>
    %cst_7 = arith.constant dense<0.000000e+00> : vector<8x32xf32>
    %7 = tpu.matmul %1, %2, %cst_7 {dimension_numbers = #tpu.dot_dimension_numbers<[1], [1], [0], [0], [0, 0, 1, 0], [], []>, precision = #tpu.contract_precision<fp32>} : vector<8x32xf32>, vector<32x32xf32>, vector<8x32xf32> -> vector<8x32xf32>
    %8 = vector.broadcast %3 : vector<1x32xf32> to vector<8x32xf32>
    %9 = arith.addf %7, %8 : vector<8x32xf32>
    %c0_8 = arith.constant 0 : index
    %c0_9 = arith.constant 0 : index
    %10 = vector.load %arg5[%c0_8, %c0_9] : memref<1x32xf32, #tpu.memory_space<vmem>>, vector<1x32xf32>
    %cst_10 = arith.constant dense<0.000000e+00> : vector<8x1xf32>
    %11 = tpu.matmul %9, %10, %cst_10 {dimension_numbers = #tpu.dot_dimension_numbers<[1], [1], [0], [0], [0, 0, 1, 0], [], []>, precision = #tpu.contract_precision<fp32>} : vector<8x32xf32>, vector<1x32xf32>, vector<8x1xf32> -> vector<8x1xf32>
    %c0_11 = arith.constant 0 : index
    %c0_12 = arith.constant 0 : index
    %12 = vector.load %arg6[%c0_11, %c0_12] : memref<1x32xf32, #tpu.memory_space<vmem>>, vector<1x32xf32>
    %cst_13 = arith.constant dense<0.000000e+00> : vector<1x16xf32>
    %13 = tpu.matmul %12, %6, %cst_13 {dimension_numbers = #tpu.dot_dimension_numbers<[1], [1], [0], [0], [0, 0, 1, 0], [], []>, precision = #tpu.contract_precision<fp32>} : vector<1x32xf32>, vector<16x32xf32>, vector<1x16xf32> -> vector<1x16xf32>
    %14 = vector.broadcast %11 : vector<8x1xf32> to vector<8x16xf32>
    %15 = vector.broadcast %13 : vector<1x16xf32> to vector<8x16xf32>
    %16 = arith.addf %14, %15 : vector<8x16xf32>
    %cst_14 = arith.constant 0.000000e+00 : f32
    %17 = vector.broadcast %cst_14 : f32 to vector<8x16xf32>
    %18 = arith.cmpf oge, %16, %17 : vector<8x16xf32>
    %cst_15 = arith.constant 2.000000e-01 : f32
    %19 = vector.broadcast %cst_15 : f32 to vector<8x16xf32>
    %20 = arith.mulf %19, %16 : vector<8x16xf32>
    %21 = arith.select %18, %16, %20 : vector<8x16xi1>, vector<8x16xf32>
    %22 = tpu.iota {dimensions = array<i32: 1>} : vector<8x16xi32>
    %c12_i32 = arith.constant 12 : i32
    %23 = vector.broadcast %c12_i32 : i32 to vector<8x16xi32>
    %24 = arith.cmpi slt, %22, %23 : vector<8x16xi32>
    %cst_16 = arith.constant -1.000000e+30 : f32
    %25 = vector.broadcast %cst_16 : f32 to vector<8x16xf32>
    %26 = arith.select %24, %21, %25 : vector<8x16xi1>, vector<8x16xf32>
    %cst_17 = arith.constant dense<0xFF800000> : vector<8xf32>
    %27 = vector.multi_reduction <maximumf>, %26, %cst_17 [1] : vector<8x16xf32> to vector<8xf32>
    %28 = vector.shape_cast %27 : vector<8xf32> to vector<8x1xf32>
    %29 = vector.broadcast %28 : vector<8x1xf32> to vector<8x16xf32>
    %30 = arith.subf %26, %29 : vector<8x16xf32>
    %31 = math.exp %30 : vector<8x16xf32>
    %cst_18 = arith.constant 0.000000e+00 : f32
    %32 = vector.broadcast %cst_18 : f32 to vector<8x16xf32>
    %33 = arith.select %24, %31, %32 : vector<8x16xi1>, vector<8x16xf32>
    %cst_19 = arith.constant dense<0.000000e+00> : vector<8xf32>
    %34 = vector.multi_reduction <add>, %33, %cst_19 [1] : vector<8x16xf32> to vector<8xf32>
    %35 = vector.shape_cast %34 : vector<8xf32> to vector<8x1xf32>
    %36 = vector.broadcast %35 : vector<8x1xf32> to vector<8x16xf32>
    %37 = arith.divf %33, %36 : vector<8x16xf32>
    %cst_20 = arith.constant 5.000000e-01 : f32
    %38 = vector.broadcast %cst_20 : f32 to vector<8x16xf32>
    %39 = arith.cmpf olt, %37, %38 : vector<8x16xf32>
    %cst_21 = arith.constant 0.000000e+00 : f32
    %40 = vector.broadcast %cst_21 : f32 to vector<8x16xf32>
    %41 = arith.select %39, %37, %40 : vector<8x16xi1>, vector<8x16xf32>
    %cst_22 = arith.constant dense<0.000000e+00> : vector<8x32xf32>
    %42 = tpu.matmul %41, %6, %cst_22 {dimension_numbers = #tpu.dot_dimension_numbers<[1], [0], [0], [1], [0, 0, 1, 1], [], []>, precision = #tpu.contract_precision<fp32>} : vector<8x16xf32>, vector<16x32xf32>, vector<8x32xf32> -> vector<8x32xf32>
    %43 = arith.subf %1, %42 : vector<8x32xf32>
    %cst_23 = arith.constant 0.000000e+00 : f32
    %44 = vector.broadcast %cst_23 : f32 to vector<8x32xf32>
    %45 = arith.cmpf ogt, %43, %44 : vector<8x32xf32>
    %cst_24 = arith.constant 0.000000e+00 : f32
    %46 = vector.broadcast %cst_24 : f32 to vector<8x32xf32>
    %47 = arith.minimumf %43, %46 : vector<8x32xf32>
    %48 = math.exp %47 : vector<8x32xf32>
    %cst_25 = arith.constant 1.000000e+00 : f32
    %49 = vector.broadcast %cst_25 : f32 to vector<8x32xf32>
    %50 = arith.subf %48, %49 : vector<8x32xf32>
    %51 = arith.select %45, %43, %50 : vector<8x32xi1>, vector<8x32xf32>
    %c0_26 = arith.constant 0 : index
    %c0_27 = arith.constant 0 : index
    %52 = vector.load %arg7[%c0_26, %c0_27] : memref<8x32xf32, #tpu.memory_space<vmem>>, vector<8x32xf32>
    tpu.vector_store %arg7[%c0_26, %c0_27], %51 {strides = array<i32>} : memref<8x32xf32, #tpu.memory_space<vmem>>, vector<8x32xf32>,
    return
  }
  func.func @transform_0(%arg0: i32) -> (i32, i32) {
    %c0_i32 = arith.constant 0 : i32
    %c0_i32_0 = arith.constant 0 : i32
    %c0_i32_1 = arith.constant 0 : i32
    return %c0_i32, %c0_i32_0 : i32, i32
  }
  func.func @transform_1(%arg0: i32) -> (i32, i32) {
    %c0_i32 = arith.constant 0 : i32
    %c0_i32_0 = arith.constant 0 : i32
    return %arg0, %c0_i32 : i32, i32
  }
  func.func @transform_2(%arg0: i32) -> (i32, i32) {
    %c0_i32 = arith.constant 0 : i32
    %c0_i32_0 = arith.constant 0 : i32
    %c0_i32_1 = arith.constant 0 : i32
    return %c0_i32, %c0_i32_0 : i32, i32
  }
  func.func @transform_3(%arg0: i32) -> (i32, i32) {
    %c0_i32 = arith.constant 0 : i32
    %c0_i32_0 = arith.constant 0 : i32
    %c0_i32_1 = arith.constant 0 : i32
    return %c0_i32, %c0_i32_0 : i32, i32
  }
  func.func @transform_4(%arg0: i32) -> (i32, i32) {
    %c0_i32 = arith.constant 0 : i32
    %c0_i32_0 = arith.constant 0 : i32
    %c0_i32_1 = arith.constant 0 : i32
    return %c0_i32, %c0_i32_0 : i32, i32
  }
  func.func @transform_5(%arg0: i32) -> (i32, i32) {
    %c0_i32 = arith.constant 0 : i32
    %c0_i32_0 = arith.constant 0 : i32
    %c0_i32_1 = arith.constant 0 : i32
    return %c0_i32, %c0_i32_0 : i32, i32
  }
  func.func @transform_6(%arg0: i32) -> (i32, i32) {
    %c0_i32 = arith.constant 0 : i32
    %c0_i32_0 = arith.constant 0 : i32
    return %arg0, %c0_i32 : i32, i32
  }
}

</mosaic_0001>

<bundles_post_ra>
// kernel: tpu_custom_call.1
= control target key start
LH: loop header
LB: loop body
LE: loop exit
PB: predicated region body
PF: predicated region fallthrough
CT: control target
= control target key end

     0   :  { %11 = vsyncpa [#allocation3], 0  ;;  %s3639_s0 = inlined_call_operand.hbm [shape: f32[16,32], index: 0, kind: input, shape index: {}]   ;;  %s3640_s1 = inlined_call_operand.hbm [shape: f32[16,32], index: 1, kind: input, shape index: {}]   ;;  %s3641_s2 = inlined_call_operand.hbm [shape: f32[32,32], index: 2, kind: input, shape index: {}]   ;;  %s3642_s3 = inlined_call_operand.vmem [shape: f32[1,32], index: 3, kind: input, shape index: {}]   ;;  %s3643_s4 = inlined_call_operand.vmem [shape: f32[1,32], index: 4, kind: input, shape index: {}]   ;;  %s3644_s5 = inlined_call_operand.vmem [shape: f32[1,32], index: 5, kind: input, shape index: {}]   ;;  %s3645_s6 = inlined_call_operand.hbm [shape: f32[16,32], index: 6, kind: output, shape index: {}]  }
   0x1   :  { %12 = vsyncpa [#allocation6], 0 }
   0x2   :  { %14 = vsyncpa [#allocation6 + $0x1], 0 }
   0x3   :  { %15 = vsyncpa [#allocation4], 0 }
   0x4   :  { %17 = vsyncpa [#allocation4 + $0x1], 0  ;;  %s3210_s21 = smov 0   ;;  %s3212_s22 = smov 0  }
   0x5   :  { %s3214_s23 = smov 0   ;;  %s3216_s24 = smov 0  }
   0x6 LB: > { %s3231_s25 = sadd.s32 4294967295, %s3164_s24   ;;  %s2427_s26 = sadd.s32 4294967294, %s3164_s24   ;;  %s3164_s24 = sphi %s3216_s24, %s3667_s24   ;;  %s3160_s23 = sphi %s3214_s23, %s3666_s23   ;;  %s3156_s22 = sphi %s3212_s22, %s3665_s22   ;;  %s3152_s21 = sphi %s3210_s21, %s3664_s21  }
   0x7   : > { %p64_p0 = scmp.ne.s32.totalorder %s3156_s22, %s3152_s21  ;;  %p3646_p1 = scmp.eq.s32.totalorder %s3231_s25, 0 }
   0x8   : > { %p178_p3 = scmp.eq.s32.totalorder %s2427_s26, 1  ;;  %p2428_p5 = scmp.ge.s32.totalorder %s3164_s24, 1 }
   0x9   : > { %p3240_p4 = por %p3646_p1, %p64_p0  ;;  %p185_p7 = scmp.lt.s32.totalorder %s3164_s24, 3 }
   0xa   : > { %p3245_p6 = por %p178_p3, %p64_p0  ;;  %s3166_s30 = smov [#allocation7]  }
   0xb   : > { %s3649_s27 = scalar_select %p3240_p4, 1, 0 }
   0xc   : > { %s3650_s28 = scalar_select %p3245_p6, 1, 0 }
   0xd   : > { %p3250_p8 = pnand %p2428_p5, %p185_p7  ;;  %s210_s7 = sshll.u32 %s3166_s30, 4  ;;  %s211_s7 = int_to_ptr.vmem [resolvable:$true] %s210_s7 }
   0xe   : > { %s3167_s9 = smov [#allocation2]   ;;  %s3004_s13 = scalar_lea.hbm %s3641_s2, 512 }
   0xf   : > { %s3651_s29 = scalar_select %p3250_p8, 1, 0 }
  0x10   : > { %p2938_p10 = pneg %p3250_p8  ;;  %s197_s10 = sshll.u32 %s3167_s9, 4  ;;  %s3263_s10 = int_to_ptr.vmem [resolvable:$true] %s197_s10 }
  0x11   : > { %p3005_p12 = scmp.ne.s32.totalorder %s3641_s2, %s3004_s13  ;;  %p3011_p5 = scmp.lt.u32.totalorder %s3004_s13, %s3641_s2 }
  0x12   : > { %p3259_p11 = pnand %p2938_p10, %p3646_p1 }
  0x14   : > { %p3006_p13 = pneg %p3259_p11 }
  0x16   : > { %p3007_p0 = pnand %p3006_p13, %p3005_p12 }
  0x18   : > { %p3008_p3 = pneg %p3007_p0 }
  0x1a   : > { %p3013_p7 = pnand %p3011_p5, %p3008_p3 }
  0x1c   : > { %3016 = shalt.err (!%p3013_p7)
}
  0x1d   : > { %s3017_s18 = scalar_lea.vmem %s211_s7, 512  ;;  %p3025_p2 = scmp.lt.s32.totalorder %s211_s7, %s211_s7 }
  0x1e   : > { %p3018_p10 = scmp.ne.s32.totalorder %s211_s7, %s3017_s18  ;;  %p3026_p6 = scmp.lt.s32.totalorder %s3017_s18, %s3017_s18 }
  0x20   : > { %p3020_p9 = pnand %p3018_p10, %p3006_p13  ;;  %p3027_p4 = por %p3026_p6, %p3025_p2 }
  0x22   : > { %p3021_p1 = pneg %p3020_p9 }
  0x24   : > { %p3028_p8 = pnand %p3027_p4, %p3021_p1 }
  0x26   : > { %3031 = shalt.err (!%p3028_p8)
}
  0x27   : > { %s3168_s19 = smov 128   ;;  %s3169_s20 = smov 8  }
  0x28   : > { %2944 = dma.hbm_to_vmem [thread:$0]  (!%p3259_p11), %s3641_s2, 512, %s211_s7, [#allocation6], %s3168_s19, %s3168_s19, %s3169_s20  }
  0x29   : > { %s3032_s12 = scalar_lea.hbm %s3639_s0, 256 }
  0x2a   : > { %p3033_p9 = scmp.ne.s32.totalorder %s3639_s0, %s3032_s12  ;;  %p3039_p4 = scmp.lt.u32.totalorder %s3032_s12, %s3639_s0 }
  0x2c   : > { %p3035_p1 = pnand %p3033_p9, %p3006_p13 }
  0x2e   : > { %p3036_p2 = pneg %p3035_p1 }
  0x30   : > { %p3041_p6 = pnand %p3039_p4, %p3036_p2 }
  0x32   : > { %3044 = shalt.err (!%p3041_p6)
}
  0x33   : > { %s3045_s7 = scalar_lea.vmem %s3263_s10, 256  ;;  %p3053_p3 = scmp.lt.s32.totalorder %s3263_s10, %s3263_s10 }
  0x34   : > { %p3046_p8 = scmp.ne.s32.totalorder %s3263_s10, %s3045_s7  ;;  %p3054_p5 = scmp.lt.s32.totalorder %s3045_s7, %s3045_s7 }
  0x36   : > { %p3048_p12 = pnand %p3046_p8, %p3006_p13  ;;  %p3055_p7 = por %p3054_p5, %p3053_p3 }
  0x38   : > { %p3049_p0 = pneg %p3048_p12 }
  0x3a   : > { %p3056_p10 = pnand %p3055_p7, %p3049_p0 }
  0x3c   : > { %3059 = shalt.err (!%p3056_p10)
}
  0x3d   : > { %2941 = dma.hbm_to_vmem [thread:$0]  (!%p3259_p11), %s3639_s0, 256, %s3263_s10, [#allocation3], %s3168_s19, %s3168_s19, %s3169_s20  }
  0x3e   : > { %s3313_s26 = sadd.s32 1, %s3164_s24   ;;  %s51_s8 = sadd.s32 1, %s3160_s23 }
  0x3f   : > { %s48_s30 = ssub.s32 %s3164_s24, %s3313_s26  ;;  %p58_p13 = scmp.ne.s32.totalorder %s3160_s23, %s3156_s22 }
  0x40   : > { %p49_p9 = scmp.eq.s32.totalorder %s48_s30, 0  ;;  %p59_p1 = scmp.eq.s32.totalorder %s3164_s24, 0 }
  0x41   : > { %p3653_p2 = scmp.eq.s32.totalorder %s3231_s25, 1  ;;  %p2955_p6 = scmp.lt.s32.totalorder %s3164_s24, 2 }
  0x42   : > { %s3329_s11 = scalar_select %p49_p9, %s3160_s23, %s51_s8  }
  0x43   : > { %p3323_p4 = por %p3653_p2, %p58_p13  ;;  %p60_p8 = por %p59_p1, %p58_p13 }
  0x44   : > { %s233_s12 = sand.u32 1, %s3164_s24   ;;  %s235_s13 = sand.u32 1, %s3160_s23  }
  0x45   : > { %s2432_s10 = sshll.u32 %s235_s13, 3  ;;  %s2433_s19 = sshll.u32 %s3164_s24, 7 }
  0x46   : > { %s3337_s15 = scalar_lea.hbm %s3640_s1, %s2433_s19  ;;  %s237_s16 = scalar_lea.vmem [#allocation5], %s2432_s10 }
  0x47   : > { %s244_s7 = sshll.u32 %s237_s16, 4  ;;  %p3339_p11 = pnand %p2955_p6, %p60_p8  ;;  %s3343_s7 = int_to_ptr.vmem [resolvable:$true] %s244_s7 }
  0x48   : > { %s234_s18 = scalar_lea.sflag [#allocation6], %s233_s12  ;;  %s3060_s8 = scalar_lea.hbm %s3337_s15, 128 }
  0x49   : > { %p3061_p12 = scmp.ne.s32.totalorder %s3337_s15, %s3060_s8  ;;  %p3062_p0 = pneg %p3339_p11 }
  0x4a   : > { %s3065_s10 = scalar_lea.hbm %s3640_s1, 256  ;;  %p3066_p7 = scmp.lt.u32.totalorder %s3337_s15, %s3640_s1 }
  0x4b   : > { %p3063_p3 = pnand %p3062_p0, %p3061_p12  ;;  %p3067_p10 = scmp.lt.u32.totalorder %s3065_s10, %s3060_s8 }
  0x4c   : > { %p3069_p9 = scmp.lt.u32.totalorder %s3060_s8, %s3337_s15 }
  0x4d   : > { %p3064_p5 = pneg %p3063_p3  ;;  %p3068_p13 = por %p3067_p10, %p3066_p7 }
  0x4f   : > { %p3070_p1 = por %p3069_p9, %p3068_p13 }
  0x51   : > { %p3071_p2 = pnand %p3070_p1, %p3064_p5 }
  0x53   : > { %3074 = shalt.err (!%p3071_p2)
}
  0x54   : > { %s3075_s12 = scalar_lea.vmem %s3343_s7, 128  ;;  %s3170_s14 = smov [#allocation5]  }
  0x55   : > { %p3076_p6 = scmp.ne.s32.totalorder %s3343_s7, %s3075_s12  ;;  %s3080_s16 = sshll.u32 %s3170_s14, 4  ;;  %s3081_s16 = int_to_ptr.vmem [resolvable:$false] %s3080_s16 }
  0x56   : > { %s3082_s30 = scalar_lea.vmem %s3081_s16, 256  ;;  %p3083_p3 = scmp.lt.s32.totalorder %s3343_s7, %s3081_s16 }
  0x57   : > { %p3078_p8 = pnand %p3076_p6, %p3062_p0  ;;  %p3084_p7 = scmp.lt.s32.totalorder %s3082_s30, %s3075_s12 }
  0x59   : > { %p3079_p12 = pneg %p3078_p8  ;;  %p3085_p10 = por %p3084_p7, %p3083_p3 }
  0x5b   : > { %p3086_p13 = pnand %p3085_p10, %p3079_p12 }
  0x5d   : > { %3089 = shalt.err (!%p3086_p13)
}
  0x5e   : > { %2948 = dma.hbm_to_vmem [thread:$0]  (!%p3339_p11), %s3337_s15, 128, %s3343_s7, %s234_s18  }
  0x5f   : > { %p3656_p5 = scmp.ne.s32.totalorder %s3651_s29, 0 }
  0x60   : > { %p3657_p0 = scmp.eq.s32.totalorder (!%p3656_p5), %s3231_s25, 0 }
  0x61   : > { %253 = sbr.rel (%p3656_p5) target bundleno = 1294 (0x50e), region = 44 }
  0x68   : > { %3135 = dma.done.wait (%p3657_p0), [#allocation3], 256   ;;  %p3658_p9 = pmov %p3657_p0 }
  0x69   : > { %s259_s8 = sand.u32 1, %s3231_s25   ;;  %s261_s13 = sand.u32 1, %s3156_s22  }
  0x6a   : > { %3137 = vsyncadd (%p3658_p9), [#allocation3], 4294967040  ;;  %s3380_s17 = sshll.u32 %s261_s13, 3  ;;  %s260_s15 = scalar_lea.sflag [#allocation6], %s259_s8 }
  0x6b   : > { %s263_s7 = scalar_lea.vmem [#allocation5], %s3380_s17  ;;  %p3659_p11 = scmp.ne.s32.totalorder %s3649_s27, 0 }
  0x6d   : > { %3139 = dma.done.wait (%p3659_p11), %s260_s15, 128  }
  0x6e   : > { %3141 = vsyncadd (%p3659_p11), %s260_s15, 4294967168  ;;  %p3660_p1 = pmov %p3657_p0 }
  0x6f   : > { %p3661_p2 = pmov %p3657_p0 }
  0x70   : > { %3143 = dma.done.wait (%p3660_p1), [#allocation6], 512  }
  0x71   : > { %3145 = vsyncadd (%p3661_p2), [#allocation6], 4294966784  ;;  %vm310_vm0 = vcmask 261120   ;;  %v299_v0 = vld [vmem:[#allocation7] sm:$0xff]  ;;  %v300_v1 = vld [vmem:[#allocation7 + $0x8] sm:$0xff]  ;;  %v3171_v47 = vmov 0.0|0.0  }
  0x72   : > { %v301_v2 = vld [vmem:[#allocation7 + $0x10] sm:$0xff]  ;;  %v318_v3 = vsel %vm310_vm0, %v299_v0, 0  ;;  %v321_v4 = vsel %vm310_vm0, %v300_v1, 0  ;;  %v302_v5 = vld [vmem:[#allocation7 + $0x18] sm:$0xff]  ;;  %v296_v7 = vld [vmem:[#allocation2] sm:$0xff]  ;;  %vm3172_vm1 = vmmov 0  }
  0x73   : > { %v324_v6 = vsel %vm310_vm0, %v301_v2, 0  ;;  %v297_v8 = vld [vmem:[#allocation2 + $0x8] sm:$0xff]  ;;  %v330_v9 = vand.u32 4294901760, %v318_v3  ;;  %v333_v10 = vand.u32 4294901760, %v321_v4  ;;  %v327_v11 = vsel %vm310_vm0, %v302_v5, 0  ;;  %v3440_v44 = vld [vmem:[%s263_s7] sm:$0xff] }
  0x74   : > { %v336_v12 = vand.u32 4294901760, %v324_v6  ;;  %v339_v13 = vand.u32 4294901760, %v327_v11  ;;  %v312_v14 = vsel %vm310_vm0, %v296_v7, 0  ;;  %v315_v15 = vsel %vm310_vm0, %v297_v8, 0  ;;  %v1356_v61 = vld [vmem:[%s3644_s5] sm:$0x1] }
  0x75   : > { %v3397_v16 = vpack.c.bf16 %v333_v10, %v330_v9  ;;  %v3399_v17 = vsub.f32 %v318_v3, %v330_v9  ;;  %v3401_v18 = vsub.f32 %v321_v4, %v333_v10  ;;  %v3409_v22 = vand.u32 4294901760, %v312_v14  ;;  %v2439_v63 = vld [vmem:[%s3642_s3] ss:$0 sm:$0xff]  ;;  %s2443_s12 = sshll.u32 %s3231_s25, 7  ;;  %s295_s14 = scalar_lea.vmem [#allocation8], %s3380_s17 }
  0x76   : > { %v3403_v19 = vsub.f32 %v324_v6, %v336_v12  ;;  %v3405_v20 = vpack.c.bf16 %v339_v13, %v336_v12  ;;  %v3407_v21 = vsub.f32 %v327_v11, %v339_v13  ;;  %v3411_v23 = vand.u32 4294901760, %v315_v15  ;;  %s2336_s16 = sshll.u32 %s295_s14, 4  ;;  %s3593_s15 = scalar_lea.hbm %s3645_s6, %s2443_s12  ;;  %s3595_s16 = int_to_ptr.vmem [resolvable:$true] %s2336_s16 }
  0x77   : > { %v421_v24 = vand.u32 4294901760, %v3399_v17  ;;  %v428_v25 = vand.u32 4294901760, %v3401_v18  ;;  %2765 = vmatprep.subr.bf16.mxu1 %v3397_v16  ;;  %2567 = vmatprep.mubr.f32.mxu0 %v3409_v22  ;;  %v399_v28 = vsub.f32 %v312_v14, %v3409_v22  ;;  %v858_v46 = vsel %vm310_vm0, %v3440_v44, 0  ;;  %s2323_s25 = scalar_lea.sflag [#allocation4], %s261_s13  ;;  %s3090_s17 = scalar_lea.vmem %s3595_s16, 128 }
  0x78   : > { %v435_v26 = vand.u32 4294901760, %v3403_v19  ;;  %v442_v27 = vand.u32 4294901760, %v3407_v21  ;;  %2767 = vmatpush3.bf16.xpose.msra.mxu1 %v3397_v16  ;;  %v3422_v29 = vsub.f32 %v315_v15, %v3411_v23  ;;  %v3447_v49 = vand.u32 4294901760, %v858_v46  ;;  %p3091_p6 = scmp.ne.s32.totalorder %s3595_s16, %s3090_s17  ;;  %s3174_s7 = smov [#allocation8]  }
  0x79   : > { %v422_v30 = vsub.f32 %v3399_v17, %v421_v24  ;;  %v429_v31 = vsub.f32 %v3401_v18, %v428_v25  ;;  %2769 = vmatprep.subr.bf16.mxu1 %v3405_v20  ;;  %v400_v34 = vand.u32 4294901760, %v399_v28  ;;  %v2780_v50 = vpack.c.bf16 %v3401_v18, %v3399_v17  ;;  %s3094_s27 = sshll.u32 %s3174_s7, 4  ;;  %s3095_s27 = int_to_ptr.vmem [resolvable:$false] %s3094_s27 }
  0x7a   : > { %v436_v32 = vsub.f32 %v3403_v19, %v435_v26  ;;  %v443_v33 = vsub.f32 %v3407_v21, %v442_v27  ;;  %v410_v38 = vand.u32 4294901760, %v3422_v29  ;;  %v930_v51 = vsub.f32 %v858_v46, %v3447_v49  ;;  %p3092_p8 = pnand %p3091_p6, %p3323_p4  ;;  %s3096_s29 = scalar_lea.vmem %s3095_s27, 256 }
  0x7b   : > { %v423_v35 = vand.u32 4294901760, %v422_v30  ;;  %v430_v36 = vand.u32 4294901760, %v429_v31  ;;  %v401_v40 = vsub.f32 %v399_v28, %v400_v34  ;;  %v3173_v52 = vmov 0.0   ;;  %p3097_p3 = scmp.lt.s32.totalorder %s3595_s16, %s3095_s27  ;;  %p3098_p7 = scmp.lt.s32.totalorder %s3096_s29, %s3090_s17 }
  0x7c   : > { %v437_v37 = vand.u32 4294901760, %v436_v32  ;;  %v444_v39 = vand.u32 4294901760, %v443_v33  ;;  %v411_v45 = vsub.f32 %v3422_v29, %v410_v38  ;;  %v931_v53 = vand.u32 4294901760, %v930_v51  ;;  %p3093_p12 = pneg %p3092_p8 }
  0x7d   : > { %v2772_v41 = vpack.c.bf16 %v430_v36, %v423_v35  ;;  %v402_v43 = vand.u32 4294901760, %v401_v40  ;;  %v2784_v54 = vpack.c.bf16 %v3407_v21, %v3403_v19  ;;  %v2796_v57 = vpack.c.bf16 %v428_v25, %v421_v24  ;;  %p3099_p10 = por %p3098_p7, %p3097_p3 }
  0x7e   : > { %v2776_v42 = vpack.c.bf16 %v444_v39, %v437_v37  ;;  %v412_v48 = vand.u32 4294901760, %v411_v45  ;;  %v932_v55 = vsub.f32 %v930_v51, %v931_v53  ;;  %v2800_v58 = vpack.c.bf16 %v442_v27, %v435_v26 }
  0x7f   : > { %2773 = vmatprep.subr.bf16.mxu0 %v2772_v41  ;;  %2556 = vmatprep.mubr.f32.mxu1 %v402_v43  ;;  %v1358_v62 = vsel %vm310_vm0, %v1356_v61, 0  ;;  %vm1837_vm4 = vcmask 130048   ;;  %p3100_p13 = pnand %p3099_p10, %p3093_p12 }
  0x80   : > { %2775 = vmatpush3.bf16.xpose.msra.mxu0 %v2772_v41  ;;  %2771 = vmatpush3.bf16.xpose.msra.mxu1 %v3405_v20  ;;  %v933_v56 = vand.u32 4294901760, %v932_v55  ;;  %v3521_v0 = vand.u32 4294901760, %v1358_v62 }
  0x81   : > { %2777 = vmatprep.subr.bf16.mxu0 %v2776_v42  ;;  %2812 = vmatprep.subr.bf16.mxu1 %v3171_v47 }
  0x82   : > { %v1434_v4 = vsub.f32 %v1358_v62, %v3521_v0 }
  0x84   : > { %v1435_v13 = vand.u32 4294901760, %v1434_v4 }
  0x86   : > { %v1436_v24 = vsub.f32 %v1434_v4, %v1435_v13 }
  0x87   : > { %2557 = vmatmul.mubr.f32.vlgmr.msra.gmra.mrb[0].mxu1 %v412_v48 }
  0x88   : > { %2779 = vmatpush3.bf16.xpose.msra.mxu0 %v2776_v42  ;;  %2814 = vmatpush3.bf16.xpose.msra.mxu1 %v3397_v16  ;;  %v1437_v35 = vand.u32 4294901760, %v1436_v24 }
  0x89   : > { %2781 = vmatprep.subr.bf16.mxu0 %v2780_v50  ;;  %2815 = vmatprep.subr.bf16.mxu1 %v3171_v47 }
  0x8a   : > { %2622 = vmatprep.mubr.msk.f32.mxu1 %vm3172_vm1, %v3173_v52 }
  0x8f   : > { %2568 = vmatmul.mubr.f32.vlgmr.msra.gmra.mrb[0].mxu0 %v3411_v23 }
  0x90   : > { %2783 = vmatpush3.bf16.xpose.msra.mxu0 %v2780_v50  ;;  %2578 = vmatprep.mubr.f32.mxu0 %v399_v28 }
  0x91   : > { %2785 = vmatprep.subr.bf16.mxu0 %v2784_v54  ;;  %2817 = vmatpush3.bf16.xpose.msra.mxu1 %v3405_v20 }
  0x92   : > { %2818 = vmatprep.subr.bf16.mxu1 %v3171_v47 }
  0x98   : > { %2787 = vmatpush3.bf16.xpose.msra.mxu0 %v2784_v54  ;;  %2623 = vmatmul.mubr.f32.vlgmr.msra.gmra.mrb[2].mxu1 %v933_v56 }
  0x99   : > { %2789 = vmatprep.subr.bf16.mxu0 %v3397_v16  ;;  %2820 = vmatpush3.bf16.xpose.msra.mxu1 %v2772_v41 }
  0x9a   : > { %2821 = vmatprep.subr.bf16.mxu1 %v3171_v47  ;;  %2633 = vmatprep.mubr.msk.f32.mxu1 %vm3172_vm1, %v3173_v52 }
  0x9f   : > { %2579 = vmatmul.mubr.f32.vlgmr.msra.gmra.mrb[0].mxu0 %v3422_v29 }
  0xa0   : > { %2791 = vmatpush3.bf16.xpose.msra.mxu0 %v3397_v16  ;;  %2589 = vmatprep.mubr.f32.mxu0 %v400_v34 }
  0xa1   : > { %2793 = vmatprep.subr.bf16.mxu0 %v3405_v20  ;;  %2823 = vmatpush3.bf16.xpose.msra.mxu1 %v2776_v42  ;;  %v2440_v42 = vld [vmem:[%s3643_s4] ss:$0 sm:$0xff] }
  0xa2   : > { %2824 = vmatprep.subr.bf16.mxu1 %v3171_v47 }
  0xa8   : > { %2795 = vmatpush3.bf16.xpose.msra.mxu0 %v3405_v20  ;;  %2634 = vmatmul.mubr.f32.vlgmr.msra.gmra.mrb[2].mxu1 %v3447_v49 }
  0xa9   : > { %2797 = vmatprep.subr.bf16.mxu0 %v2796_v57  ;;  %2826 = vmatpush3.bf16.xpose.msra.mxu1 %v2780_v50 }
  0xaa   : > { %2827 = vmatprep.subr.bf16.mxu1 %v3171_v47  ;;  %2644 = vmatprep.mubr.msk.f32.mxu1 %vm3172_vm1, %v3173_v52 }
  0xaf   : > { %2590 = vmatmul.mubr.f32.vlgmr.msra.gmra.mrb[0].mxu0 %v410_v38 }
  0xb0   : > { %2799 = vmatpush3.bf16.xpose.msra.mxu0 %v2796_v57  ;;  %2600 = vmatprep.mubr.f32.mxu0 %v3409_v22 }
  0xb1   : > { %2801 = vmatprep.subr.bf16.mxu0 %v2800_v58  ;;  %2829 = vmatpush3.bf16.xpose.msra.mxu1 %v2784_v54 }
  0xb2   : > { %2830 = vmatprep.subr.bf16.mxu1 %v3171_v47 }
  0xb8   : > { %2803 = vmatpush3.bf16.xpose.msra.mxu0 %v2800_v58  ;;  %2645 = vmatmul.mubr.f32.vlgmr.msra.gmra.mrb[2].mxu1 %v930_v51 }
  0xb9   : > { %2805 = vmatprep.subr.bf16.mxu0 %v3397_v16  ;;  %2832 = vmatpush3.bf16.xpose.msra.mxu1 %v3397_v16 }
  0xba   : > { %2833 = vmatprep.subr.bf16.mxu1 %v3171_v47  ;;  %2655 = vmatprep.mubr.msk.f32.mxu1 %vm3172_vm1, %v3173_v52 }
  0xbf   : > { %2601 = vmatmul.mubr.f32.vlgmr.msra.gmra.mrb[0].mxu0 %v3411_v23 }
  0xc0   : > { %2807 = vmatpush3.bf16.xpose.msra.mxu0 %v3397_v16  ;;  %2611 = vmatprep.mubr.f32.mxu0 %v3409_v22 }
  0xc1   : > { %2809 = vmatprep.subr.bf16.mxu0 %v3405_v20  ;;  %2835 = vmatpush3.bf16.xpose.msra.mxu1 %v3405_v20 }
  0xc2   : > { %2836 = vmatprep.subr.bf16.mxu1 %v3171_v47 }
  0xc8   : > { %2811 = vmatpush3.bf16.xpose.msra.mxu0 %v3405_v20  ;;  %2656 = vmatmul.mubr.f32.vlgmr.msra.gmra.mrb[2].mxu1 %v931_v53 }
  0xc9   : > { %2838 = vmatpush3.bf16.xpose.msra.mxu1 %v2796_v57  ;;  %2666 = vmatprep.mubr.msk.f32.mxu1 %vm3172_vm1, %v3173_v52 }
  0xca   : > { %2839 = vmatprep.subr.bf16.mxu1 %v3171_v47  ;;  %2848 = vmatprep.subr.bf16.mxu0 %v3171_v47 }
  0xcf   : > { %2612 = vmatmul.mubr.f32.vlgmr.msra.gmra.mrb[0].mxu0 %v3411_v23 }
  0xd0   : > { %2684 = vmatprep.mubr.msk.f32.mxu0 %vm3172_vm1, %v3173_v52 }
  0xd1   : > { %2841 = vmatpush3.bf16.xpose.msra.mxu1 %v2800_v58 }
  0xd2   : > { %2842 = vmatprep.subr.bf16.mxu1 %v3171_v47 }
  0xd8   : > { %2667 = vmatmul.mubr.f32.vlgmr.msra.gmra.mrb[2].mxu1 %v3447_v49 }
  0xd9   : > { %2844 = vmatpush3.bf16.xpose.msra.mxu1 %v3397_v16  ;;  %2677 = vmatprep.mubr.msk.f32.mxu1 %vm3172_vm1, %v3173_v52 }
  0xda   : > { %2845 = vmatprep.subr.bf16.mxu1 %v3171_v47 }
  0xe1   : > { %2847 = vmatpush3.bf16.xpose.msra.mxu1 %v3405_v20 }
  0xe2   : > { %2869 = vmatprep.subr.bf16.mxu1 %v3171_v47 }
  0xe8   : > { %2678 = vmatmul.mubr.f32.vlgmr.msra.gmra.mrb[2].mxu1 %v3447_v49  ;;  %v1825_v49 = vlaneseq }
  0xe9   : > { %2733 = vmatprep.mubr.msk.f32.mxu1 %vm3172_vm1, %v3173_v52 }
  0xea   : > { %v1826_v50 = vshrl.u32 %v1825_v49, 7  ;;  %v1834_v56 = vand.u32 127, %v1825_v49 }
  0xec   : > { %v1827_v51 = vsub.s32 0, %v1826_v50  ;;  %vm1835_vm3 = vcmp.lt.s32.totalorder %v1834_v56, 12 }
 0x15a   : > { %v2558_v59 = vpop.f32.mrb[0].mxu1 }
 0x15b   : > { %v404_v60 = vpop.f32.mrb[1].mxu1  ;;  %v415_v1 = vadd.f32 %v2558_v59, %v2439_v63 }
 0x15c   : > { %v405_v2 = vadd.f32 %v2439_v63, %v404_v60 }
 0x1a2   : > { %v2613_v3 = vpop.f32.mrb[0].mxu0 }
 0x1a3   : > { %v2885_v5 = vadd.f32 %v2613_v3, %v415_v1  ;;  %v847_v6 = vpop.f32.mrb[1].mxu0 }
 0x1a4   : > { %v2887_v7 = vadd.f32 %v847_v6, %v405_v2 }
 0x1a5   : > { %v1364_v8 = vsel %vm310_vm0, %v2885_v5, 0  ;;  %v1859_v9 = vand.u32 4294901760, %v2885_v5 }
 0x1a6   : > { %v1370_v10 = vand.u32 4294901760, %v1364_v8  ;;  %v1361_v11 = vsel %vm310_vm0, %v2887_v7, 0  ;;  %v1856_v12 = vand.u32 4294901760, %v2887_v7 }
 0x1a7   : > { %v3526_v14 = vsub.f32 %v2885_v5, %v1859_v9  ;;  %v1367_v15 = vand.u32 4294901760, %v1361_v11 }
 0x1a8   : > { %v1452_v16 = vsub.f32 %v1364_v8, %v1370_v10  ;;  %v3528_v17 = vpack.c.bf16 %v1859_v9, %v1856_v12  ;;  %v3530_v18 = vsub.f32 %v2887_v7, %v1856_v12 }
 0x1a9   : > { %v1942_v19 = vand.u32 4294901760, %v3526_v14  ;;  %v1445_v20 = vsub.f32 %v1361_v11, %v1367_v15  ;;  %v2849_v21 = vpack.c.bf16 %v1370_v10, %v1367_v15 }
 0x1aa   : > { %v1453_v22 = vand.u32 4294901760, %v1452_v16  ;;  %v1935_v23 = vand.u32 4294901760, %v3530_v18  ;;  %v2873_v25 = vpack.c.bf16 %v3526_v14, %v3530_v18 }
 0x1ab   : > { %v1943_v26 = vsub.f32 %v3526_v14, %v1942_v19  ;;  %v1446_v27 = vand.u32 4294901760, %v1445_v20  ;;  %2850 = vmatpush3.bf16.xpose.msra.mxu0 %v2849_v21  ;;  %v2855_v28 = vpack.c.bf16 %v1452_v16, %v1445_v20 }
 0x1ac   : > { %v1936_v29 = vsub.f32 %v3530_v18, %v1935_v23  ;;  %2851 = vmatprep.subr.bf16.mxu0 %v3171_v47  ;;  %v1454_v30 = vsub.f32 %v1452_v16, %v1453_v22  ;;  %v3539_v31 = vpack.c.bf16 %v1942_v19, %v1935_v23 }
 0x1ad   : > { %v1944_v32 = vand.u32 4294901760, %v1943_v26  ;;  %v1447_v33 = vsub.f32 %v1445_v20, %v1446_v27  ;;  %v2861_v34 = vpack.c.bf16 %v1453_v22, %v1446_v27 }
 0x1ae   : > { %v1937_v36 = vand.u32 4294901760, %v1936_v29  ;;  %v1455_v37 = vand.u32 4294901760, %v1454_v30 }
 0x1af   : > { %v1448_v38 = vand.u32 4294901760, %v1447_v33 }
 0x1b0   : > { %v2870_v39 = vpack.c.bf16 %v1944_v32, %v1937_v36 }
 0x1b1   : > { %v2852_v40 = vpack.c.bf16 %v1455_v37, %v1448_v38 }
 0x1b2   : > { %2685 = vmatmul.mubr.f32.vlgmr.msra.gmra.mrb[2].mxu0 %v1437_v35  ;;  %2871 = vmatpush3.bf16.msra.mxu1 %v2870_v39 }
 0x1b3   : > { %2853 = vmatpush3.bf16.xpose.msra.mxu0 %v2852_v40  ;;  %2691 = vmatprep.mubr.msk.f32.mxu0 %vm3172_vm1, %v3173_v52 }
 0x1b4   : > { %2854 = vmatprep.subr.bf16.mxu0 %v3171_v47  ;;  %2872 = vmatprep.subr.bf16.mxu1 %v3171_v47 }
 0x1ba   : > { %2692 = vmatmul.mubr.f32.vlgmr.msra.gmra.mrb[2].mxu0 %v3521_v0 }
 0x1bb   : > { %2856 = vmatpush3.bf16.xpose.msra.mxu0 %v2855_v28  ;;  %2698 = vmatprep.mubr.msk.f32.mxu0 %vm3172_vm1, %v3173_v52  ;;  %v1341_v41 = vpop.f32.mrb[2].mxu1 }
 0x1bc   : > { %2857 = vmatprep.subr.bf16.mxu0 %v3171_v47  ;;  %v2888_v43 = vadd.f32 %v2439_v63, %v1341_v41  ;;  %v2679_v45 = vpop.f32.mrb[3].mxu1 }
 0x1be   : > { %v1352_v46 = vmul.f32 %v2888_v43, %v2440_v42 }
 0x1c0   : > { %v1353_v48 = vsel %vm310_vm0, %v1352_v46, 0.0 }
 0x1c1   : > { %1354 = vadd.xlane.f32.xlu0 %v1353_v48 }
 0x1c2   : > { %2699 = vmatmul.mubr.f32.vlgmr.msra.gmra.mrb[2].mxu0 %v1434_v4 }
 0x1c3   : > { %2859 = vmatpush3.bf16.xpose.msra.mxu0 %v2849_v21  ;;  %2705 = vmatprep.mubr.msk.f32.mxu0 %vm3172_vm1, %v3173_v52 }
 0x1c4   : > { %2860 = vmatprep.subr.bf16.mxu0 %v3171_v47 }
 0x1ca   : > { %2706 = vmatmul.mubr.f32.vlgmr.msra.gmra.mrb[2].mxu0 %v1435_v13 }
 0x1cb   : > { %2862 = vmatpush3.bf16.xpose.msra.mxu0 %v2861_v34  ;;  %2712 = vmatprep.mubr.msk.f32.mxu0 %vm3172_vm1, %v3173_v52 }
 0x1cc   : > { %2863 = vmatprep.subr.bf16.mxu0 %v3171_v47 }
 0x1d2   : > { %2713 = vmatmul.mubr.f32.vlgmr.msra.gmra.mrb[2].mxu0 %v3521_v0 }
 0x1d3   : > { %2865 = vmatpush3.bf16.xpose.msra.mxu0 %v2849_v21  ;;  %2719 = vmatprep.mubr.msk.f32.mxu0 %vm3172_vm1, %v3173_v52 }
 0x1d4   : > { %2866 = vmatprep.subr.bf16.mxu0 %v3171_v47 }
 0x1da   : > { %2720 = vmatmul.mubr.f32.vlgmr.msra.gmra.mrb[2].mxu0 %v3521_v0 }
 0x1db   : > { %2868 = vmatpush3.bf16.msra.mxu0 %v3528_v17  ;;  %2726 = vmatprep.mubr.msk.f32.mxu0 %vm3172_vm1, %v3173_v52 }
 0x24e   : > { %v1355_v57 = vpop.xlane.xlu0 %1354 }
 0x2ad   : > { %v1821_v53 = vpop.f32.mrb[2].mxu0 }
 0x2ae   : > { %v1828_v54 = vrot.slane %v1821_v53, %v1827_v51  ;;  %v2721_v55 = vpop.f32.mrb[3].mxu0 }
 0x2b0   : > { %v1829_v58 = vadd.f32 %v1828_v54, %v1355_v57 }
 0x2b2   : > { %vm1830_vm2 = vcmp.ge.f32.partialorder %v1829_v58, 0.0  ;;  %v1831_v59 = vmul.f32 0.2, %v1829_v58 }
 0x2b4   : > { %v1832_v60 = vsel %vm1830_vm2, %v1829_v58, %v1831_v59 }
 0x2b5   : > { %v1836_v61 = vsel %vm1835_vm3, %v1832_v60, -1e+30 }
 0x2b6   : > { %v1838_v62 = vsel %vm1837_vm4, %v1836_v61, -inf }
 0x2b7   : > { %1839 = vmax.xlane.f32.xlu0 %v1838_v62 }
 0x344   : > { %v1840_v63 = vpop.xlane.xlu0 %1839 }
 0x345   : > { %v1841_v0 = vsub.f32 %v1836_v61, %v1840_v63 }
 0x347   : > { %v1842_v1 = vmul.f32 1.442695, %v1841_v0 }
 0x349   : > { %2998 = vpow2.f32 %v1842_v1 }
 0x353   : > { %v2999_v2 = vpop.eup %2998 }
 0x354   : > { %v1844_v3 = vsel %vm1835_vm3, %v2999_v2, 0.0 }
 0x355   : > { %v1845_v4 = vsel %vm1837_vm4, %v1844_v3, 0.0 }
 0x356   : > { %1846 = vadd.xlane.f32.xlu1 %v1845_v4 }
 0x3e3   : > { %v1847_v5 = vpop.xlane.xlu1 %1846 }
 0x3e4   : > { %3000 = vrcp.f32 %v1847_v5 }
 0x3ee   : > { %v3001_v6 = vpop.eup %3000 }
 0x3ef   : > { %v1849_v7 = vmul.f32 %v3001_v6, %v1844_v3 }
 0x3f1   : > { %vm1850_vm5 = vcmp.lt.f32.partialorder %v1849_v7, 0.5 }
 0x3f2   : > { %v1851_v8 = vsel %vm1850_vm5, %v1849_v7, 0.0 }
 0x3f3   : > { %v1853_v9 = vsel %vm1837_vm4, %v1851_v8, 0 }
 0x3f4   : > { %v1922_v10 = vand.u32 4294901760, %v1853_v9 }
 0x3f6   : > { %v1923_v11 = vsub.f32 %v1853_v9, %v1922_v10  ;;  %2734 = vmatmul.mubr.f32.vlgmr.msra.gmra.mrb[4].mxu1 %v1922_v10 }
 0x3f7   : > { %2874 = vmatpush3.bf16.msra.mxu1 %v2873_v25  ;;  %2740 = vmatprep.mubr.msk.f32.mxu1 %vm3172_vm1, %v3173_v52 }
 0x3f8   : > { %2875 = vmatprep.subr.bf16.mxu1 %v3171_v47  ;;  %v1924_v12 = vand.u32 4294901760, %v1923_v11 }
 0x3fa   : > { %v1925_v13 = vsub.f32 %v1923_v11, %v1924_v12 }
 0x3fc   : > { %v1926_v15 = vand.u32 4294901760, %v1925_v13 }
 0x3fe   : > { %2727 = vmatmul.mubr.f32.vlgmr.msra.gmra.mrb[4].mxu0 %v1926_v15  ;;  %2741 = vmatmul.mubr.f32.vlgmr.msra.gmra.mrb[4].mxu1 %v1923_v11 }
 0x3ff   : > { %2877 = vmatpush3.bf16.msra.mxu1 %v3528_v17  ;;  %2747 = vmatprep.mubr.msk.f32.mxu1 %vm3172_vm1, %v3173_v52 }
 0x400   : > { %2878 = vmatprep.subr.bf16.mxu1 %v3171_v47 }
 0x406   : > { %2748 = vmatmul.mubr.f32.vlgmr.msra.gmra.mrb[4].mxu1 %v1924_v12 }
 0x407   : > { %2880 = vmatpush3.bf16.msra.mxu1 %v3539_v31  ;;  %2754 = vmatprep.mubr.msk.f32.mxu1 %vm3172_vm1, %v3173_v52 }
 0x408   : > { %2881 = vmatprep.subr.bf16.mxu1 %v3171_v47 }
 0x40e   : > { %2755 = vmatmul.mubr.f32.vlgmr.msra.gmra.mrb[4].mxu1 %v1922_v10 }
 0x40f   : > { %2883 = vmatpush3.bf16.msra.mxu1 %v3528_v17  ;;  %2761 = vmatprep.mubr.msk.f32.mxu1 %vm3172_vm1, %v3173_v52 }
 0x416   : > { %2762 = vmatmul.mubr.f32.vlgmr.msra.gmra.mrb[4].mxu1 %v1922_v10 }
 0x4d1   : > { %v1928_v14 = vpop.f32.mrb[4].mxu0 }
 0x4d2   : > { %v2728_v16 = vpop.f32.mrb[5].mxu0 }
 0x4e9   : > { %v2310_v18 = vpop.f32.mrb[4].mxu1 }
 0x4ea   : > { %v2889_v19 = vadd.f32 %v2310_v18, %v1928_v14  ;;  %v2763_v20 = vpop.f32.mrb[5].mxu1 }
 0x4ec   : > { %v2314_v21 = vsub.f32 %v3440_v44, %v2889_v19 }
 0x4ee   : > { %v2316_v22 = vmin.f32 %v2314_v21, 0.0  ;;  %vm2315_vm6 = vcmp.gt.f32.partialorder %v2314_v21, 0.0 }
 0x4f0   : > { %v2317_v23 = vmul.f32 1.442695, %v2316_v22 }
 0x4f2   : > { %3002 = vpow2.f32 %v2317_v23 }
 0x4fc   : > { %v3003_v47 = vpop.eup %3002 }
 0x4fd   : > { %v2441_v17 = vadd.f32 -1.0, %v3003_v47 }
 0x4ff   : > { %v2320_v44 = vsel %vm2315_vm6, %v2314_v21, %v2441_v17 }
 0x500   : > { %2321 = vst.msk [vmem:[%s295_s14] sm:$0xff] %vm310_vm0, %v2320_v44 }
 0x501   : > { %3103 = shalt.err (!%p3100_p13)
}
 0x502   : > { %s3104_s13 = scalar_lea.hbm %s3593_s15, 128  ;;  %s3108_s19 = scalar_lea.hbm %s3645_s6, 256 }
 0x503   : > { %p3105_p5 = scmp.ne.s32.totalorder %s3593_s15, %s3104_s13  ;;  %p3109_p11 = scmp.lt.u32.totalorder %s3593_s15, %s3645_s6 }
 0x504   : > { %p3110_p1 = scmp.lt.u32.totalorder %s3108_s19, %s3104_s13  ;;  %p3112_p6 = scmp.lt.u32.totalorder %s3104_s13, %s3593_s15 }
 0x505   : > { %p3106_p0 = pnand %p3105_p5, %p3323_p4 }
 0x506   : > { %p3111_p2 = por %p3110_p1, %p3109_p11 }
 0x507   : > { %p3107_p9 = pneg %p3106_p0 }
 0x508   : > { %p3113_p8 = por %p3112_p6, %p3111_p2 }
 0x50a   : > { %p3114_p12 = pnand %p3113_p8, %p3107_p9 }
 0x50c   : > { %3117 = shalt.err (!%p3114_p12)
}
 0x50d   : > { %2936 = dma.vmem_to_hbm [thread:$0]  (%p3323_p4), %s3595_s16, 128, %s3593_s15, %s2323_s25  }
 0x50e PF: > { %s2348_s14 = sand.u32 1, %s3152_s21   ;;  %p3662_p3 = scmp.ne.s32.totalorder %s3650_s28, 0 }
 0x50f   : > { %p3663_p7 = scmp.ge.s32.totalorder %s3164_s24, 2  ;;  %s2349_s30 = scalar_lea.sflag [#allocation4], %s2348_s14 }
 0x511   : > { %p2950_p10 = pnand %p3663_p7, %p3662_p3 }
 0x513   : > { %3147 = dma.done.wait (!%p2950_p10), %s2349_s30, 128  }
 0x514   : > { %3149 = vsyncadd (!%p2950_p10), %s2349_s30, 4294967168  ;;  %p20_p13 = scmp.ge.s32.totalorder %s3313_s26, 4   ;;  %s3664_s21 = smov %s3156_s22 }
 0x515   : > { %s3665_s22 = smov %s3160_s23  ;;  %s3666_s23 = smov %s3329_s11 }
 0x516   : > { %s3667_s24 = smov %s3313_s26  ;;  %22 = sbr.rel (!%p20_p13) target bundleno = 6 (0x6), region = 98 }
 0x51d   :  { %2354 = vsyncpa [#allocation3], 1 }
 0x51e   :  { %2356 = vsyncpa [#allocation3 + $0x1], 1 }
 0x51f   :  { %2357 = vsyncpa [#allocation6], 1 }
 0x520   :  { %2359 = vsyncpa [#allocation6 + $0x1], 1 }
 0x521   :  { %2360 = vsyncpa [#allocation4], 1 }
 0x522   :  { %2362 = vsyncpa [#allocation4 + $0x1], 1 }

</bundles_post_ra>
